<compile_context>
chip_gen: v6e
topology: v6e:2x2x1
jax: 0.10.0
libtpu: 0.0.40
codegen_flags: <defaults>
</compile_context>

<pallas_src>
import functools
import math

import jax
import jax.numpy as jnp
from jax.experimental import pallas as pl
from jax.experimental.pallas import tpu as pltpu


# ----------------------------------------------------------------------------
# VMEM budgeting (chip-aware: v7x has 64 MiB/TC vs 128 MiB on v5e/v6e).
# ----------------------------------------------------------------------------
def _vmem_budgets():
    try:
        cap = int(pltpu.get_tpu_info().vmem_capacity_bytes)
    except Exception:  # conservative (v7x-sized) fallback
        cap = 64 * 1024 * 1024
    budget = max(16 * 1024 * 1024, min(int(cap * 0.55), 96 * 1024 * 1024))
    limit = max(24 * 1024 * 1024, min(int(cap * 0.70), 112 * 1024 * 1024))
    return budget, limit


_VMEM_BUDGET_BYTES, _VMEM_LIMIT_BYTES = _vmem_budgets()
_LANE = 128  # vreg lane width: lm_head output dim is padded to a multiple


def _round_up(n, m):
    return ((n + m - 1) // m) * m


def _choose_tile_rows(rows, per_row_f32_elems, resident_bytes, max_tile=512):
    """Largest multiple-of-8 row tile such that (a) double-buffered activation
    tiles + resident params fit the VMEM budget, (b) tile <= 512 rows (~85% of
    HBM roofline already), and (c) the grid has >=2 steps whenever rows >= 16
    so the "parallel" axis can shard across v7x's two TensorCores."""
    avail = max(_VMEM_BUDGET_BYTES - 2 * resident_bytes, 2 * 1024 * 1024)
    tile = avail // (4 * per_row_f32_elems)
    tile = max(8, min((tile // 8) * 8, max_tile))
    tile = min(tile, _round_up(rows, 8))
    if rows >= 16:
        tile = min(tile, _round_up(_round_up(rows, 16) // 2, 8))
    return int(tile)


# ----------------------------------------------------------------------------
# Fused forward kernel (one grid step = one row tile through the whole model)
# ----------------------------------------------------------------------------
def _fused_tram_kernel(
    x_ref, z_ref,
    wa_ref, ba_ref,                                       # folded lm_in1∘wpe1
    g1_ref, be1_ref, w11_ref, b11_ref, w12_ref, b12_ref,  # block1
    wh1_ref,                                              # lm_head1 (padded N)
    wpx_ref, wz_ref, bc_ref,                              # folded wpe2 (+lm_in2)
    g2_ref, be2_ref, w21_ref, b21_ref, w22_ref, b22_ref,  # block2
    wh2_ref,                                              # lm_head2 (padded N)
    l1_ref, l2_ref,
    *, approx_gelu,
):
    x = x_ref[...].astype(jnp.float32)
    z = z_ref[...].astype(jnp.float32)

    def dot(a, w_ref):
        # MXU runs in the weight dtype (f32 or bf16), accumulates in f32.
        return jnp.dot(a.astype(w_ref.dtype), w_ref[...],
                       preferred_element_type=jnp.float32)

    def layer_norm(v, g_ref, b_ref):
        mu = jnp.mean(v, axis=-1, keepdims=True)
        vc = v - mu
        var = jnp.mean(vc * vc, axis=-1, keepdims=True)
        return vc * jax.lax.rsqrt(var + 1e-5) * g_ref[...] + b_ref[...]

    def gelu(h):
        if approx_gelu:
            # tanh GELU runs on the EUP (free slot when VALU-bound, e.g. v5e)
            return jax.nn.gelu(h, approximate=True)
        # exact erf GELU, matching nn.GELU() default (approximate='none')
        return 0.5 * h * (1.0 + jax.lax.erf(h * (1.0 / math.sqrt(2.0))))

    def block(v, g_ref, b_ref, w1_ref, b1_ref, w2_ref, b2_ref):
        hn = layer_norm(v, g_ref, b_ref)
        h = gelu(dot(hn, w1_ref) + b1_ref[...])
        # Dropout(p=0) is identity for the forward value.
        return v + dot(h, w2_ref) + b2_ref[...]

    # stage 1: xe = wpe1(lm_in1(x))   (folded into one matmul)
    xe = dot(x, wa_ref) + ba_ref[...]
    xb = block(xe, g1_ref, be1_ref, w11_ref, b11_ref, w12_ref, b12_ref)
    # x.detach() only affects gradients; identity for the forward value.
    l1_ref[...] = dot(xb, wh1_ref).astype(l1_ref.dtype)   # lane-dense store

    # stage 2: xz = wpe2(cat(xb, lm_in2(z)))  folded: xb@Wpx + z@Wz + b
    xz = dot(xb, wpx_ref) + dot(z, wz_ref) + bc_ref[...]
    xz = block(xz, g2_ref, be2_ref, w21_ref, b21_ref, w22_ref, b22_ref)
    l2_ref[...] = dot(xz, wh2_ref).astype(l2_ref.dtype)   # lane-dense store


# ----------------------------------------------------------------------------
# One-time parameter preparation (folding + transposes hoisted out of forward)
# ----------------------------------------------------------------------------
_PARAM_ORDER = ("wa", "ba",
                "g1", "be1", "w11", "b11", "w12", "b12",
                "wh1",
                "wpx", "wz", "bc",
                "g2", "be2", "w21", "b21", "w22", "b22",
                "wh2")


def prepare_params(raw, param_dtype=jnp.float32, lane_pad=_LANE):
    """Call ONCE, reuse forever.
      * folds lm_in1 -> wpe1 into one (IN_X, C) weight + bias
      * splits wpe2 and folds lm_in2 into its z-half (deletes the concat)
      * transposes Linear weights to (in, out) layout, optionally bf16 for the
        MXU (recommended on v6e/v7x); all folding is done in f32
      * zero-pads lm_head output dim to a multiple of 128 (lane-dense stores)
      * biases / LayerNorm params stay f32 rows
    ln_f exists in the module but is never used in TramModel.forward."""
    f32 = lambda a: jnp.asarray(a, jnp.float32)

    def vec(b, n):
        return jnp.zeros((n,), jnp.float32) if b is None else f32(b)

    W_in1 = f32(raw["lm_in1"][0]); b_in1 = vec(raw["lm_in1"][1], W_in1.shape[0])
    W_in2 = f32(raw["lm_in2"][0]); b_in2 = vec(raw["lm_in2"][1], W_in2.shape[0])
    W_pe1 = f32(raw["wpe1"][0]);   b_pe1 = vec(raw["wpe1"][1], W_pe1.shape[0])
    W_pe2 = f32(raw["wpe2"][0]);   b_pe2 = vec(raw["wpe2"][1], W_pe2.shape[0])
    c = W_pe1.shape[0]

    # (a) fold lm_in1 ∘ wpe1:  x @ (Wpe1 @ Win1)^T + (Wpe1 @ b_in1 + b_pe1)
    wa = (W_pe1 @ W_in1).T.astype(param_dtype)                  # (IN_X, C)
    ba = (W_pe1 @ b_in1 + b_pe1).reshape(1, c)

    # (b) split wpe2, fold lm_in2 into the z-half
    W_pe2x, W_pe2z = W_pe2[:, :c], W_pe2[:, c:]
    wpx = W_pe2x.T.astype(param_dtype)                          # (C, C)
    wz = (W_pe2z @ W_in2).T.astype(param_dtype)                 # (IN_Z, C)
    bc = (b_pe2 + W_pe2z @ b_in2).reshape(1, c)

    def block(p):
        ln_w, ln_b, w1, b1, w2, b2 = p
        hdim = w1.shape[0]
        return (f32(ln_w).reshape(1, c), vec(ln_b, c).reshape(1, c),
                f32(w1).T.astype(param_dtype), vec(b1, hdim).reshape(1, hdim),
                f32(w2).T.astype(param_dtype), vec(b2, c).reshape(1, c))

    g1, be1, w11, b11, w12, b12 = block(raw["block1"])
    g2, be2, w21, b21, w22, b22 = block(raw["block2"])

    def head(p):
        w = f32(p[0])                                           # (OUT, C)
        n_out = w.shape[0]
        out_pad = _round_up(max(n_out, lane_pad), lane_pad)
        wt = jnp.zeros((c, out_pad), jnp.float32).at[:, :n_out].set(w.T)
        return wt.astype(param_dtype)

    return dict(wa=wa, ba=ba, g1=g1, be1=be1, w11=w11, b11=b11, w12=w12,
                b12=b12, wh1=head(raw["lm_head1"]), wpx=wpx, wz=wz, bc=bc,
                g2=g2, be2=be2, w21=w21, b21=b21, w22=w22, b22=b22,
                wh2=head(raw["lm_head2"]))


# ----------------------------------------------------------------------------
# Loss + full model forward (one pallas_call)
# ----------------------------------------------------------------------------
def _cross_entropy(logits, targets, ignore_index=-1):
    # TODO(synk): masked-mean scalar reduction stays in plain JAX/XLA (far too
    # small for a kernel).  Returns 0 (not NaN) if every target is ignored.
    logits = logits.astype(jnp.float32)
    valid = targets != ignore_index
    safe_t = jnp.where(valid, targets, 0)
    logz = jax.nn.logsumexp(logits, axis=-1)
    picked = jnp.take_along_axis(logits, safe_t[:, None], axis=-1)[:, 0]
    nll = jnp.where(valid, logz - picked, 0.0)
    return jnp.sum(nll) / jnp.maximum(jnp.sum(valid), 1)


def tram_forward(params, x, z, targets, *, out_size, approx_gelu=False,
                 tile_rows=None):
    """TramModel.forward: returns (logits1, loss1 + loss2, loss1)."""
    rows, in_x = x.shape
    in_z = z.shape[1]
    ws = [params[k] for k in _PARAM_ORDER]
    c = params["wpx"].shape[0]
    h = params["w11"].shape[1]
    out_pad = params["wh1"].shape[1]

    resident = sum(int(a.size) * a.dtype.itemsize for a in ws)
    per_row = 2 * (in_x + in_z) + 4 * out_pad + 4 * c + 2 * h
    tile = tile_rows or _choose_tile_rows(rows, per_row, resident)

    rows_p = _round_up(rows, tile)
    if rows_p != rows:
        # pad ONCE at the model input; zero rows are finite through LN / GELU
        x = jnp.pad(x, ((0, rows_p - rows), (0, 0)))
        z = jnp.pad(z, ((0, rows_p - rows), (0, 0)))

    def act_spec(cols):
        return pl.BlockSpec((tile, cols), lambda i: (i, 0))

    def res_spec(a):
        # constant index_map => loaded once, stays VMEM-resident across steps.
        # TODO(synk): pipeline_mode=pl.Buffered(1) would drop the second
        # buffer; irrelevant at <1 MiB of params here.
        return pl.BlockSpec(a.shape, lambda i: (0, 0))

    out_struct = jax.ShapeDtypeStruct((rows_p, out_pad), jnp.float32)
    kern = functools.partial(_fused_tram_kernel, approx_gelu=approx_gelu)

    logits1_p, logits2_p = pl.pallas_call(
        kern,
        out_shape=(out_struct, out_struct),
        grid=(rows_p // tile,),
        in_specs=[act_spec(in_x), act_spec(in_z)] + [res_spec(a) for a in ws],
        out_specs=(pl.BlockSpec((tile, out_pad), lambda i: (i, 0)),
                   pl.BlockSpec((tile, out_pad), lambda i: (i, 0))),
        compiler_params=pltpu.CompilerParams(
            dimension_semantics=("parallel",),
            vmem_limit_bytes=_VMEM_LIMIT_BYTES,
        ),
    )(x, z, *ws)

    logits1 = logits1_p[:rows, :out_size]
    logits2 = logits2_p[:rows, :out_size]
    loss1 = _cross_entropy(logits1, targets)
    loss2 = _cross_entropy(logits2, targets)
    return logits1, loss1 + loss2, loss1


# ----------------------------------------------------------------------------
# Plain-JAX reference (matches the PyTorch module; unfolded, f32, erf GELU)
# ----------------------------------------------------------------------------
def _linear_ref(x, w, b):
    y = x @ jnp.asarray(w, jnp.float32).T
    return y if b is None else y + b


def _layer_norm_ref(x, g, b, eps=1e-5):
    mu = jnp.mean(x, axis=-1, keepdims=True)
    var = jnp.mean((x - mu) ** 2, axis=-1, keepdims=True)
    return (x - mu) / jnp.sqrt(var + eps) * g + b


def _block_ref(x, p):
    ln_w, ln_b, w1, b1, w2, b2 = p
    h = _layer_norm_ref(x, ln_w, 0.0 if ln_b is None else ln_b)
    h = jax.nn.gelu(_linear_ref(h, w1, b1), approximate=False)
    return x + _linear_ref(h, w2, b2)


def tram_reference(raw, x, z, targets):
    xe = _linear_ref(x, *raw["lm_in1"])
    ze = _linear_ref(z, *raw["lm_in2"])
    xe = _linear_ref(xe, *raw["wpe1"])
    xb = _block_ref(xe, raw["block1"])
    logits1 = _linear_ref(xb, *raw["lm_head1"])
    loss1 = _cross_entropy(logits1, targets)
    xz = jnp.concatenate([xb, ze], axis=1)
    xz = _linear_ref(xz, *raw["wpe2"])
    xz = _block_ref(xz, raw["block2"])
    logits2 = _linear_ref(xz, *raw["lm_head2"])
    loss2 = _cross_entropy(logits2, targets)
    return logits1, loss1 + loss2, loss1


# ----------------------------------------------------------------------------
# Demo / self-test
# ----------------------------------------------------------------------------
if __name__ == "__main__":
    # config: input_size_x=48, input_size_z=16, n_embd=32, output_size=16,
    #         bias=True, dropout=0.0 ; batch B=16
    B, IN_X, IN_Z, C, OUT = 16, 48, 16, 32, 16
    H = 4 * C

    keys = iter(jax.random.split(jax.random.PRNGKey(0), 32))
    nk = lambda: next(keys)
    nrm = lambda shape, s=0.02: s * jax.random.normal(nk(), shape, jnp.float32)

    # synthetic deterministic parameters (PyTorch weight conventions)
    raw = {
        "lm_in1": (nrm((C, IN_X)), nrm((C,), 0.01)),
        "lm_in2": (nrm((C, IN_Z)), nrm((C,), 0.01)),
        "wpe1": (nrm((C, C)), nrm((C,), 0.01)),
        "block1": (1.0 + nrm((C,), 0.05), nrm((C,), 0.02),
                   nrm((H, C)), nrm((H,), 0.01), nrm((C, H)), nrm((C,), 0.01)),
        "wpe2": (nrm((C, 2 * C)), nrm((C,), 0.01)),
        "block2": (1.0 + nrm((C,), 0.05), nrm((C,), 0.02),
                   nrm((H, C)), nrm((H,), 0.01), nrm((C, H)), nrm((C,), 0.01)),
        "lm_head1": (nrm((OUT, C)), None),
        "lm_head2": (nrm((OUT, C)), None),
    }

    x = jax.random.normal(nk(), (B, IN_X), jnp.float32)
    z = jax.random.normal(nk(), (B, IN_Z), jnp.float32)
    targets = jax.random.randint(nk(), (B,), 0, OUT, dtype=jnp.int32).at[0].set(-1)

    # one-time parameter prep (fold + transpose hoisted out of the forward)
    params_f32 = prepare_params(raw, jnp.float32)
    params_bf16 = prepare_params(raw, jnp.bfloat16)  # bf16 MXU operands (v6e/v7x)

    fwd = jax.jit(functools.partial(tram_forward, out_size=OUT))

    # ---- f32 path: tight check against the plain-JAX reference -------------
    logits1, total_loss, loss1 = jax.block_until_ready(fwd(params_f32, x, z, targets))
    r_logits1, r_total, r_loss1 = tram_reference(raw, x, z, targets)
    assert logits1.shape == (B, OUT)
    assert jnp.allclose(logits1, r_logits1, atol=2e-4, rtol=2e-4), "logits1 mismatch"
    assert jnp.allclose(total_loss, r_total, atol=2e-4, rtol=2e-4), "total loss mismatch"
    assert jnp.allclose(loss1, r_loss1, atol=2e-4, rtol=2e-4), "loss1 mismatch"

    # ---- bf16-MXU path (recommended default on v6e/v7x): looser tolerance --
    b_logits1, b_total, _ = jax.block_until_ready(fwd(params_bf16, x, z, targets))
    assert jnp.allclose(b_logits1, r_logits1, atol=5e-2, rtol=5e-2), "bf16 logits1 mismatch"
    assert jnp.allclose(b_total, r_total, atol=5e-2, rtol=5e-2), "bf16 loss mismatch"

    # ---- bigger batch: exercises row padding + multi-step "parallel" grid --
    B2 = 200
    x2 = jax.random.normal(nk(), (B2, IN_X), jnp.float32)
    z2 = jax.random.normal(nk(), (B2, IN_Z), jnp.float32)
    t2 = jax.random.randint(nk(), (B2,), 0, OUT, dtype=jnp.int32)
    big_logits1, big_total, big_loss1 = jax.block_until_ready(
        fwd(params_f32, x2, z2, t2))
    rb_logits1, rb_total, rb_loss1 = tram_reference(raw, x2, z2, t2)
    assert big_logits1.shape == (B2, OUT)
    assert jnp.allclose(big_logits1, rb_logits1, atol=2e-4, rtol=2e-4), \
        "big-batch logits1 mismatch"
    assert jnp.allclose(big_total, rb_total, atol=2e-4, rtol=2e-4), \
        "big-batch loss mismatch"

    print("KERNEL_OK")
</pallas_src>

<mosaic_0001>
module attributes {stable_mosaic.version = 11 : i64} {
  func.func @_fused_tram_kernel(%arg0: i32, %arg1: memref<8x48xf32, #tpu.memory_space<vmem>>, %arg2: memref<8x16xf32, #tpu.memory_space<vmem>>, %arg3: memref<48x32xf32, #tpu.memory_space<vmem>>, %arg4: memref<1x32xf32, #tpu.memory_space<vmem>>, %arg5: memref<1x32xf32, #tpu.memory_space<vmem>>, %arg6: memref<1x32xf32, #tpu.memory_space<vmem>>, %arg7: memref<32x128xf32, #tpu.memory_space<vmem>>, %arg8: memref<1x128xf32, #tpu.memory_space<vmem>>, %arg9: memref<128x32xf32, #tpu.memory_space<vmem>>, %arg10: memref<1x32xf32, #tpu.memory_space<vmem>>, %arg11: memref<32x128xf32, #tpu.memory_space<vmem>>, %arg12: memref<32x32xf32, #tpu.memory_space<vmem>>, %arg13: memref<16x32xf32, #tpu.memory_space<vmem>>, %arg14: memref<1x32xf32, #tpu.memory_space<vmem>>, %arg15: memref<1x32xf32, #tpu.memory_space<vmem>>, %arg16: memref<1x32xf32, #tpu.memory_space<vmem>>, %arg17: memref<32x128xf32, #tpu.memory_space<vmem>>, %arg18: memref<1x128xf32, #tpu.memory_space<vmem>>, %arg19: memref<128x32xf32, #tpu.memory_space<vmem>>, %arg20: memref<1x32xf32, #tpu.memory_space<vmem>>, %arg21: memref<32x128xf32, #tpu.memory_space<vmem>>, %arg22: memref<8x128xf32, #tpu.memory_space<vmem>>, %arg23: memref<8x128xf32, #tpu.memory_space<vmem>>) attributes {dimension_semantics = [#tpu.dimension_semantics<parallel>], iteration_bounds = array<i64: 2>, scalar_prefetch = 0 : i64, scratch_operands = 0 : i64, tpu.core_type = #tpu.core_type<tc>, window_params = [{transform_indices = @transform_0, window_bounds = array<i64: 8, 48>}, {transform_indices = @transform_1, window_bounds = array<i64: 8, 16>}, {pipeline_mode = #tpu.pipeline_mode<synchronous>, transform_indices = @transform_2, window_bounds = array<i64: 48, 32>}, {pipeline_mode = #tpu.pipeline_mode<synchronous>, transform_indices = @transform_3, window_bounds = array<i64: 1, 32>}, {pipeline_mode = #tpu.pipeline_mode<synchronous>, transform_indices = @transform_4, window_bounds = array<i64: 1, 32>}, {pipeline_mode = #tpu.pipeline_mode<synchronous>, transform_indices = @transform_5, window_bounds = array<i64: 1, 32>}, {pipeline_mode = #tpu.pipeline_mode<synchronous>, transform_indices = @transform_6, window_bounds = array<i64: 32, 128>}, {pipeline_mode = #tpu.pipeline_mode<synchronous>, transform_indices = @transform_7, window_bounds = array<i64: 1, 128>}, {pipeline_mode = #tpu.pipeline_mode<synchronous>, transform_indices = @transform_8, window_bounds = array<i64: 128, 32>}, {pipeline_mode = #tpu.pipeline_mode<synchronous>, transform_indices = @transform_9, window_bounds = array<i64: 1, 32>}, {pipeline_mode = #tpu.pipeline_mode<synchronous>, transform_indices = @transform_10, window_bounds = array<i64: 32, 128>}, {pipeline_mode = #tpu.pipeline_mode<synchronous>, transform_indices = @transform_11, window_bounds = array<i64: 32, 32>}, {pipeline_mode = #tpu.pipeline_mode<synchronous>, transform_indices = @transform_12, window_bounds = array<i64: 16, 32>}, {pipeline_mode = #tpu.pipeline_mode<synchronous>, transform_indices = @transform_13, window_bounds = array<i64: 1, 32>}, {pipeline_mode = #tpu.pipeline_mode<synchronous>, transform_indices = @transform_14, window_bounds = array<i64: 1, 32>}, {pipeline_mode = #tpu.pipeline_mode<synchronous>, transform_indices = @transform_15, window_bounds = array<i64: 1, 32>}, {pipeline_mode = #tpu.pipeline_mode<synchronous>, transform_indices = @transform_16, window_bounds = array<i64: 32, 128>}, {pipeline_mode = #tpu.pipeline_mode<synchronous>, transform_indices = @transform_17, window_bounds = array<i64: 1, 128>}, {pipeline_mode = #tpu.pipeline_mode<synchronous>, transform_indices = @transform_18, window_bounds = array<i64: 128, 32>}, {pipeline_mode = #tpu.pipeline_mode<synchronous>, transform_indices = @transform_19, window_bounds = array<i64: 1, 32>}, {pipeline_mode = #tpu.pipeline_mode<synchronous>, transform_indices = @transform_20, window_bounds = array<i64: 32, 128>}, {transform_indices = @transform_21, window_bounds = array<i64: 8, 128>}, {transform_indices = @transform_22, window_bounds = array<i64: 8, 128>}]} {
    %c0 = arith.constant 0 : index
    %c0_0 = arith.constant 0 : index
    %0 = vector.load %arg1[%c0, %c0_0] : memref<8x48xf32, #tpu.memory_space<vmem>>, vector<8x48xf32>
    %c0_1 = arith.constant 0 : index
    %c0_2 = arith.constant 0 : index
    %1 = vector.load %arg2[%c0_1, %c0_2] : memref<8x16xf32, #tpu.memory_space<vmem>>, vector<8x16xf32>
    %c0_3 = arith.constant 0 : index
    %c0_4 = arith.constant 0 : index
    %2 = vector.load %arg3[%c0_3, %c0_4] : memref<48x32xf32, #tpu.memory_space<vmem>>, vector<48x32xf32>
    %cst = arith.constant dense<0.000000e+00> : vector<8x32xf32>
    %3 = tpu.matmul %0, %2, %cst {dimension_numbers = #tpu.dot_dimension_numbers<[1], [0], [0], [1], [0, 0, 1, 1], [], []>} : vector<8x48xf32>, vector<48x32xf32>, vector<8x32xf32> -> vector<8x32xf32>
    %c0_5 = arith.constant 0 : index
    %c0_6 = arith.constant 0 : index
    %4 = vector.load %arg4[%c0_5, %c0_6] : memref<1x32xf32, #tpu.memory_space<vmem>>, vector<1x32xf32>
    %5 = vector.broadcast %4 : vector<1x32xf32> to vector<8x32xf32>
    %6 = arith.addf %3, %5 : vector<8x32xf32>
    %cst_7 = arith.constant dense<0.000000e+00> : vector<8xf32>
    %7 = vector.multi_reduction <add>, %6, %cst_7 [1] : vector<8x32xf32> to vector<8xf32>
    %8 = vector.shape_cast %7 : vector<8xf32> to vector<8x1xf32>
    %cst_8 = arith.constant 3.200000e+01 : f32
    %9 = vector.broadcast %cst_8 : f32 to vector<8x1xf32>
    %10 = arith.divf %8, %9 : vector<8x1xf32>
    %11 = vector.broadcast %10 : vector<8x1xf32> to vector<8x32xf32>
    %12 = arith.subf %6, %11 : vector<8x32xf32>
    %13 = arith.mulf %12, %12 : vector<8x32xf32>
    %cst_9 = arith.constant dense<0.000000e+00> : vector<8xf32>
    %14 = vector.multi_reduction <add>, %13, %cst_9 [1] : vector<8x32xf32> to vector<8xf32>
    %15 = vector.shape_cast %14 : vector<8xf32> to vector<8x1xf32>
    %cst_10 = arith.constant 3.200000e+01 : f32
    %16 = vector.broadcast %cst_10 : f32 to vector<8x1xf32>
    %17 = arith.divf %15, %16 : vector<8x1xf32>
    %cst_11 = arith.constant 9.99999974E-6 : f32
    %18 = vector.broadcast %cst_11 : f32 to vector<8x1xf32>
    %19 = arith.addf %17, %18 : vector<8x1xf32>
    %20 = math.rsqrt %19 : vector<8x1xf32>
    %21 = vector.broadcast %20 : vector<8x1xf32> to vector<8x32xf32>
    %22 = arith.mulf %12, %21 : vector<8x32xf32>
    %c0_12 = arith.constant 0 : index
    %c0_13 = arith.constant 0 : index
    %23 = vector.load %arg5[%c0_12, %c0_13] : memref<1x32xf32, #tpu.memory_space<vmem>>, vector<1x32xf32>
    %24 = vector.broadcast %23 : vector<1x32xf32> to vector<8x32xf32>
    %25 = arith.mulf %22, %24 : vector<8x32xf32>
    %c0_14 = arith.constant 0 : index
    %c0_15 = arith.constant 0 : index
    %26 = vector.load %arg6[%c0_14, %c0_15] : memref<1x32xf32, #tpu.memory_space<vmem>>, vector<1x32xf32>
    %27 = vector.broadcast %26 : vector<1x32xf32> to vector<8x32xf32>
    %28 = arith.addf %25, %27 : vector<8x32xf32>
    %c0_16 = arith.constant 0 : index
    %c0_17 = arith.constant 0 : index
    %29 = vector.load %arg7[%c0_16, %c0_17] : memref<32x128xf32, #tpu.memory_space<vmem>>, vector<32x128xf32>
    %cst_18 = arith.constant dense<0.000000e+00> : vector<8x128xf32>
    %30 = tpu.matmul %28, %29, %cst_18 {dimension_numbers = #tpu.dot_dimension_numbers<[1], [0], [0], [1], [0, 0, 1, 1], [], []>} : vector<8x32xf32>, vector<32x128xf32>, vector<8x128xf32> -> vector<8x128xf32>
    %c0_19 = arith.constant 0 : index
    %c0_20 = arith.constant 0 : index
    %31 = vector.load %arg8[%c0_19, %c0_20] : memref<1x128xf32, #tpu.memory_space<vmem>>, vector<1x128xf32>
    %32 = vector.broadcast %31 : vector<1x128xf32> to vector<8x128xf32>
    %33 = arith.addf %30, %32 : vector<8x128xf32>
    %cst_21 = arith.constant 5.000000e-01 : f32
    %34 = vector.broadcast %cst_21 : f32 to vector<8x128xf32>
    %35 = arith.mulf %34, %33 : vector<8x128xf32>
    %cst_22 = arith.constant 0.707106769 : f32
    %36 = vector.broadcast %cst_22 : f32 to vector<8x128xf32>
    %37 = arith.mulf %33, %36 : vector<8x128xf32>
    %38 = math.erf %37 : vector<8x128xf32>
    %cst_23 = arith.constant 1.000000e+00 : f32
    %39 = vector.broadcast %cst_23 : f32 to vector<8x128xf32>
    %40 = arith.addf %39, %38 : vector<8x128xf32>
    %41 = arith.mulf %35, %40 : vector<8x128xf32>
    %c0_24 = arith.constant 0 : index
    %c0_25 = arith.constant 0 : index
    %42 = vector.load %arg9[%c0_24, %c0_25] : memref<128x32xf32, #tpu.memory_space<vmem>>, vector<128x32xf32>
    %cst_26 = arith.constant dense<0.000000e+00> : vector<8x32xf32>
    %43 = tpu.matmul %41, %42, %cst_26 {dimension_numbers = #tpu.dot_dimension_numbers<[1], [0], [0], [1], [0, 0, 1, 1], [], []>} : vector<8x128xf32>, vector<128x32xf32>, vector<8x32xf32> -> vector<8x32xf32>
    %44 = arith.addf %6, %43 : vector<8x32xf32>
    %c0_27 = arith.constant 0 : index
    %c0_28 = arith.constant 0 : index
    %45 = vector.load %arg10[%c0_27, %c0_28] : memref<1x32xf32, #tpu.memory_space<vmem>>, vector<1x32xf32>
    %46 = vector.broadcast %45 : vector<1x32xf32> to vector<8x32xf32>
    %47 = arith.addf %44, %46 : vector<8x32xf32>
    %c0_29 = arith.constant 0 : index
    %c0_30 = arith.constant 0 : index
    %48 = vector.load %arg11[%c0_29, %c0_30] : memref<32x128xf32, #tpu.memory_space<vmem>>, vector<32x128xf32>
    %cst_31 = arith.constant dense<0.000000e+00> : vector<8x128xf32>
    %49 = tpu.matmul %47, %48, %cst_31 {dimension_numbers = #tpu.dot_dimension_numbers<[1], [0], [0], [1], [0, 0, 1, 1], [], []>} : vector<8x32xf32>, vector<32x128xf32>, vector<8x128xf32> -> vector<8x128xf32>
    %c0_32 = arith.constant 0 : index
    %c0_33 = arith.constant 0 : index
    %50 = vector.load %arg22[%c0_32, %c0_33] : memref<8x128xf32, #tpu.memory_space<vmem>>, vector<8x128xf32>
    tpu.vector_store %arg22[%c0_32, %c0_33], %49 {strides = array<i32>} : memref<8x128xf32, #tpu.memory_space<vmem>>, vector<8x128xf32>,
    %c0_34 = arith.constant 0 : index
    %c0_35 = arith.constant 0 : index
    %51 = vector.load %arg12[%c0_34, %c0_35] : memref<32x32xf32, #tpu.memory_space<vmem>>, vector<32x32xf32>
    %cst_36 = arith.constant dense<0.000000e+00> : vector<8x32xf32>
    %52 = tpu.matmul %47, %51, %cst_36 {dimension_numbers = #tpu.dot_dimension_numbers<[1], [0], [0], [1], [0, 0, 1, 1], [], []>} : vector<8x32xf32>, vector<32x32xf32>, vector<8x32xf32> -> vector<8x32xf32>
    %c0_37 = arith.constant 0 : index
    %c0_38 = arith.constant 0 : index
    %53 = vector.load %arg13[%c0_37, %c0_38] : memref<16x32xf32, #tpu.memory_space<vmem>>, vector<16x32xf32>
    %cst_39 = arith.constant dense<0.000000e+00> : vector<8x32xf32>
    %54 = tpu.matmul %1, %53, %cst_39 {dimension_numbers = #tpu.dot_dimension_numbers<[1], [0], [0], [1], [0, 0, 1, 1], [], []>} : vector<8x16xf32>, vector<16x32xf32>, vector<8x32xf32> -> vector<8x32xf32>
    %55 = arith.addf %52, %54 : vector<8x32xf32>
    %c0_40 = arith.constant 0 : index
    %c0_41 = arith.constant 0 : index
    %56 = vector.load %arg14[%c0_40, %c0_41] : memref<1x32xf32, #tpu.memory_space<vmem>>, vector<1x32xf32>
    %57 = vector.broadcast %56 : vector<1x32xf32> to vector<8x32xf32>
    %58 = arith.addf %55, %57 : vector<8x32xf32>
    %cst_42 = arith.constant dense<0.000000e+00> : vector<8xf32>
    %59 = vector.multi_reduction <add>, %58, %cst_42 [1] : vector<8x32xf32> to vector<8xf32>
    %60 = vector.shape_cast %59 : vector<8xf32> to vector<8x1xf32>
    %cst_43 = arith.constant 3.200000e+01 : f32
    %61 = vector.broadcast %cst_43 : f32 to vector<8x1xf32>
    %62 = arith.divf %60, %61 : vector<8x1xf32>
    %63 = vector.broadcast %62 : vector<8x1xf32> to vector<8x32xf32>
    %64 = arith.subf %58, %63 : vector<8x32xf32>
    %65 = arith.mulf %64, %64 : vector<8x32xf32>
    %cst_44 = arith.constant dense<0.000000e+00> : vector<8xf32>
    %66 = vector.multi_reduction <add>, %65, %cst_44 [1] : vector<8x32xf32> to vector<8xf32>
    %67 = vector.shape_cast %66 : vector<8xf32> to vector<8x1xf32>
    %cst_45 = arith.constant 3.200000e+01 : f32
    %68 = vector.broadcast %cst_45 : f32 to vector<8x1xf32>
    %69 = arith.divf %67, %68 : vector<8x1xf32>
    %cst_46 = arith.constant 9.99999974E-6 : f32
    %70 = vector.broadcast %cst_46 : f32 to vector<8x1xf32>
    %71 = arith.addf %69, %70 : vector<8x1xf32>
    %72 = math.rsqrt %71 : vector<8x1xf32>
    %73 = vector.broadcast %72 : vector<8x1xf32> to vector<8x32xf32>
    %74 = arith.mulf %64, %73 : vector<8x32xf32>
    %c0_47 = arith.constant 0 : index
    %c0_48 = arith.constant 0 : index
    %75 = vector.load %arg15[%c0_47, %c0_48] : memref<1x32xf32, #tpu.memory_space<vmem>>, vector<1x32xf32>
    %76 = vector.broadcast %75 : vector<1x32xf32> to vector<8x32xf32>
    %77 = arith.mulf %74, %76 : vector<8x32xf32>
    %c0_49 = arith.constant 0 : index
    %c0_50 = arith.constant 0 : index
    %78 = vector.load %arg16[%c0_49, %c0_50] : memref<1x32xf32, #tpu.memory_space<vmem>>, vector<1x32xf32>
    %79 = vector.broadcast %78 : vector<1x32xf32> to vector<8x32xf32>
    %80 = arith.addf %77, %79 : vector<8x32xf32>
    %c0_51 = arith.constant 0 : index
    %c0_52 = arith.constant 0 : index
    %81 = vector.load %arg17[%c0_51, %c0_52] : memref<32x128xf32, #tpu.memory_space<vmem>>, vector<32x128xf32>
    %cst_53 = arith.constant dense<0.000000e+00> : vector<8x128xf32>
    %82 = tpu.matmul %80, %81, %cst_53 {dimension_numbers = #tpu.dot_dimension_numbers<[1], [0], [0], [1], [0, 0, 1, 1], [], []>} : vector<8x32xf32>, vector<32x128xf32>, vector<8x128xf32> -> vector<8x128xf32>
    %c0_54 = arith.constant 0 : index
    %c0_55 = arith.constant 0 : index
    %83 = vector.load %arg18[%c0_54, %c0_55] : memref<1x128xf32, #tpu.memory_space<vmem>>, vector<1x128xf32>
    %84 = vector.broadcast %83 : vector<1x128xf32> to vector<8x128xf32>
    %85 = arith.addf %82, %84 : vector<8x128xf32>
    %cst_56 = arith.constant 5.000000e-01 : f32
    %86 = vector.broadcast %cst_56 : f32 to vector<8x128xf32>
    %87 = arith.mulf %86, %85 : vector<8x128xf32>
    %cst_57 = arith.constant 0.707106769 : f32
    %88 = vector.broadcast %cst_57 : f32 to vector<8x128xf32>
    %89 = arith.mulf %85, %88 : vector<8x128xf32>
    %90 = math.erf %89 : vector<8x128xf32>
    %cst_58 = arith.constant 1.000000e+00 : f32
    %91 = vector.broadcast %cst_58 : f32 to vector<8x128xf32>
    %92 = arith.addf %91, %90 : vector<8x128xf32>
    %93 = arith.mulf %87, %92 : vector<8x128xf32>
    %c0_59 = arith.constant 0 : index
    %c0_60 = arith.constant 0 : index
    %94 = vector.load %arg19[%c0_59, %c0_60] : memref<128x32xf32, #tpu.memory_space<vmem>>, vector<128x32xf32>
    %cst_61 = arith.constant dense<0.000000e+00> : vector<8x32xf32>
    %95 = tpu.matmul %93, %94, %cst_61 {dimension_numbers = #tpu.dot_dimension_numbers<[1], [0], [0], [1], [0, 0, 1, 1], [], []>} : vector<8x128xf32>, vector<128x32xf32>, vector<8x32xf32> -> vector<8x32xf32>
    %96 = arith.addf %58, %95 : vector<8x32xf32>
    %c0_62 = arith.constant 0 : index
    %c0_63 = arith.constant 0 : index
    %97 = vector.load %arg20[%c0_62, %c0_63] : memref<1x32xf32, #tpu.memory_space<vmem>>, vector<1x32xf32>
    %98 = vector.broadcast %97 : vector<1x32xf32> to vector<8x32xf32>
    %99 = arith.addf %96, %98 : vector<8x32xf32>
    %c0_64 = arith.constant 0 : index
    %c0_65 = arith.constant 0 : index
    %100 = vector.load %arg21[%c0_64, %c0_65] : memref<32x128xf32, #tpu.memory_space<vmem>>, vector<32x128xf32>
    %cst_66 = arith.constant dense<0.000000e+00> : vector<8x128xf32>
    %101 = tpu.matmul %99, %100, %cst_66 {dimension_numbers = #tpu.dot_dimension_numbers<[1], [0], [0], [1], [0, 0, 1, 1], [], []>} : vector<8x32xf32>, vector<32x128xf32>, vector<8x128xf32> -> vector<8x128xf32>
    %c0_67 = arith.constant 0 : index
    %c0_68 = arith.constant 0 : index
    %102 = vector.load %arg23[%c0_67, %c0_68] : memref<8x128xf32, #tpu.memory_space<vmem>>, vector<8x128xf32>
    tpu.vector_store %arg23[%c0_67, %c0_68], %101 {strides = array<i32>} : memref<8x128xf32, #tpu.memory_space<vmem>>, vector<8x128xf32>,
    return
  }
  func.func @transform_0(%arg0: i32) -> (i32, i32) {
    %c0_i32 = arith.constant 0 : i32
    %c0_i32_0 = arith.constant 0 : i32
    return %arg0, %c0_i32 : i32, i32
  }
  func.func @transform_1(%arg0: i32) -> (i32, i32) {
    %c0_i32 = arith.constant 0 : i32
    %c0_i32_0 = arith.constant 0 : i32
    return %arg0, %c0_i32 : i32, i32
  }
  func.func @transform_2(%arg0: i32) -> (i32, i32) {
    %c0_i32 = arith.constant 0 : i32
    %c0_i32_0 = arith.constant 0 : i32
    %c0_i32_1 = arith.constant 0 : i32
    return %c0_i32, %c0_i32_0 : i32, i32
  }
  func.func @transform_3(%arg0: i32) -> (i32, i32) {
    %c0_i32 = arith.constant 0 : i32
    %c0_i32_0 = arith.constant 0 : i32
    %c0_i32_1 = arith.constant 0 : i32
    return %c0_i32, %c0_i32_0 : i32, i32
  }
  func.func @transform_4(%arg0: i32) -> (i32, i32) {
    %c0_i32 = arith.constant 0 : i32
    %c0_i32_0 = arith.constant 0 : i32
    %c0_i32_1 = arith.constant 0 : i32
    return %c0_i32, %c0_i32_0 : i32, i32
  }
  func.func @transform_5(%arg0: i32) -> (i32, i32) {
    %c0_i32 = arith.constant 0 : i32
    %c0_i32_0 = arith.constant 0 : i32
    %c0_i32_1 = arith.constant 0 : i32
    return %c0_i32, %c0_i32_0 : i32, i32
  }
  func.func @transform_6(%arg0: i32) -> (i32, i32) {
    %c0_i32 = arith.constant 0 : i32
    %c0_i32_0 = arith.constant 0 : i32
    %c0_i32_1 = arith.constant 0 : i32
    return %c0_i32, %c0_i32_0 : i32, i32
  }
  func.func @transform_7(%arg0: i32) -> (i32, i32) {
    %c0_i32 = arith.constant 0 : i32
    %c0_i32_0 = arith.constant 0 : i32
    %c0_i32_1 = arith.constant 0 : i32
    return %c0_i32, %c0_i32_0 : i32, i32
  }
  func.func @transform_8(%arg0: i32) -> (i32, i32) {
    %c0_i32 = arith.constant 0 : i32
    %c0_i32_0 = arith.constant 0 : i32
    %c0_i32_1 = arith.constant 0 : i32
    return %c0_i32, %c0_i32_0 : i32, i32
  }
  func.func @transform_9(%arg0: i32) -> (i32, i32) {
    %c0_i32 = arith.constant 0 : i32
    %c0_i32_0 = arith.constant 0 : i32
    %c0_i32_1 = arith.constant 0 : i32
    return %c0_i32, %c0_i32_0 : i32, i32
  }
  func.func @transform_10(%arg0: i32) -> (i32, i32) {
    %c0_i32 = arith.constant 0 : i32
    %c0_i32_0 = arith.constant 0 : i32
    %c0_i32_1 = arith.constant 0 : i32
    return %c0_i32, %c0_i32_0 : i32, i32
  }
  func.func @transform_11(%arg0: i32) -> (i32, i32) {
    %c0_i32 = arith.constant 0 : i32
    %c0_i32_0 = arith.constant 0 : i32
    %c0_i32_1 = arith.constant 0 : i32
    return %c0_i32, %c0_i32_0 : i32, i32
  }
  func.func @transform_12(%arg0: i32) -> (i32, i32) {
    %c0_i32 = arith.constant 0 : i32
    %c0_i32_0 = arith.constant 0 : i32
    %c0_i32_1 = arith.constant 0 : i32
    return %c0_i32, %c0_i32_0 : i32, i32
  }
  func.func @transform_13(%arg0: i32) -> (i32, i32) {
    %c0_i32 = arith.constant 0 : i32
    %c0_i32_0 = arith.constant 0 : i32
    %c0_i32_1 = arith.constant 0 : i32
    return %c0_i32, %c0_i32_0 : i32, i32
  }
  func.func @transform_14(%arg0: i32) -> (i32, i32) {
    %c0_i32 = arith.constant 0 : i32
    %c0_i32_0 = arith.constant 0 : i32
    %c0_i32_1 = arith.constant 0 : i32
    return %c0_i32, %c0_i32_0 : i32, i32
  }
  func.func @transform_15(%arg0: i32) -> (i32, i32) {
    %c0_i32 = arith.constant 0 : i32
    %c0_i32_0 = arith.constant 0 : i32
    %c0_i32_1 = arith.constant 0 : i32
    return %c0_i32, %c0_i32_0 : i32, i32
  }
  func.func @transform_16(%arg0: i32) -> (i32, i32) {
    %c0_i32 = arith.constant 0 : i32
    %c0_i32_0 = arith.constant 0 : i32
    %c0_i32_1 = arith.constant 0 : i32
    return %c0_i32, %c0_i32_0 : i32, i32
  }
  func.func @transform_17(%arg0: i32) -> (i32, i32) {
    %c0_i32 = arith.constant 0 : i32
    %c0_i32_0 = arith.constant 0 : i32
    %c0_i32_1 = arith.constant 0 : i32
    return %c0_i32, %c0_i32_0 : i32, i32
  }
  func.func @transform_18(%arg0: i32) -> (i32, i32) {
    %c0_i32 = arith.constant 0 : i32
    %c0_i32_0 = arith.constant 0 : i32
    %c0_i32_1 = arith.constant 0 : i32
    return %c0_i32, %c0_i32_0 : i32, i32
  }
  func.func @transform_19(%arg0: i32) -> (i32, i32) {
    %c0_i32 = arith.constant 0 : i32
    %c0_i32_0 = arith.constant 0 : i32
    %c0_i32_1 = arith.constant 0 : i32
    return %c0_i32, %c0_i32_0 : i32, i32
  }
  func.func @transform_20(%arg0: i32) -> (i32, i32) {
    %c0_i32 = arith.constant 0 : i32
    %c0_i32_0 = arith.constant 0 : i32
    %c0_i32_1 = arith.constant 0 : i32
    return %c0_i32, %c0_i32_0 : i32, i32
  }
  func.func @transform_21(%arg0: i32) -> (i32, i32) {
    %c0_i32 = arith.constant 0 : i32
    %c0_i32_0 = arith.constant 0 : i32
    return %arg0, %c0_i32 : i32, i32
  }
  func.func @transform_22(%arg0: i32) -> (i32, i32) {
    %c0_i32 = arith.constant 0 : i32
    %c0_i32_0 = arith.constant 0 : i32
    return %arg0, %c0_i32 : i32, i32
  }
}

</mosaic_0001>

<bundles_post_ra>
// kernel: tram_forward.1
= control target key start
LH: loop header
LB: loop body
LE: loop exit
PB: predicated region body
PF: predicated region fallthrough
CT: control target
= control target key end

     0   :  { %s2357_s0 = inlined_call_operand.vmem [shape: f32[16,48], index: 0, kind: input, shape index: {}]   ;;  %s2358_s1 = inlined_call_operand.vmem [shape: f32[16,16], index: 1, kind: input, shape index: {}]   ;;  %s2359_s2 = inlined_call_operand.vmem [shape: f32[48,32], index: 2, kind: input, shape index: {}]   ;;  %s2360_s3 = inlined_call_operand.vmem [shape: f32[1,32], index: 3, kind: input, shape index: {}]   ;;  %s2361_s4 = inlined_call_operand.vmem [shape: f32[1,32], index: 4, kind: input, shape index: {}]   ;;  %s2362_s5 = inlined_call_operand.vmem [shape: f32[1,32], index: 5, kind: input, shape index: {}]   ;;  %s2363_s6 = inlined_call_operand.vmem [shape: f32[32,128], index: 6, kind: input, shape index: {}]   ;;  %s2364_s7 = inlined_call_operand.vmem [shape: f32[1,128], index: 7, kind: input, shape index: {}]   ;;  %s2365_s8 = inlined_call_operand.vmem [shape: f32[128,32], index: 8, kind: input, shape index: {}]   ;;  %s2366_s9 = inlined_call_operand.vmem [shape: f32[1,32], index: 9, kind: input, shape index: {}]   ;;  %s2367_s10 = inlined_call_operand.vmem [shape: f32[32,128], index: 10, kind: input, shape index: {}]   ;;  %s2368_s11 = inlined_call_operand.vmem [shape: f32[32,32], index: 11, kind: input, shape index: {}]   ;;  %s2369_s12 = inlined_call_operand.vmem [shape: f32[16,32], index: 12, kind: input, shape index: {}]   ;;  %s2370_s13 = inlined_call_operand.vmem [shape: f32[1,32], index: 13, kind: input, shape index: {}]   ;;  %s2371_s14 = inlined_call_operand.vmem [shape: f32[1,32], index: 14, kind: input, shape index: {}]   ;;  %s2372_s15 = inlined_call_operand.vmem [shape: f32[1,32], index: 15, kind: input, shape index: {}]   ;;  %s2373_s16 = inlined_call_operand.vmem [shape: f32[32,128], index: 16, kind: input, shape index: {}]   ;;  %s2374_s17 = inlined_call_operand.vmem [shape: f32[1,128], index: 17, kind: input, shape index: {}]   ;;  %s2375_s18 = inlined_call_operand.vmem [shape: f32[128,32], index: 18, kind: input, shape index: {}]   ;;  %s2376_s19 = inlined_call_operand.vmem [shape: f32[1,32], index: 19, kind: input, shape index: {}]   ;;  %s2377_s20 = inlined_call_operand.vmem [shape: f32[32,128], index: 20, kind: input, shape index: {}]   ;;  %s2378_s21 = inlined_call_operand.vmem [shape: f32[16,128], index: 21, kind: output, shape index: {0}]   ;;  %s2379_s22 = inlined_call_operand.vmem [shape: f32[16,128], index: 22, kind: output, shape index: {1}]  }
   0x1   :  { %2382 = sst [smem:[#allocation2_spill]] %s2357_s0 }
   0x2   :  { %2383 = sst [smem:[#allocation3_spill]] %s2358_s1 }
   0x3   :  { %2384 = sst [smem:[#allocation4_spill]] %s2359_s2 }
   0x4   :  { %2385 = sst [smem:[#allocation5_spill]] %s2360_s3  ;;  %s2021_s3 = smov 0  }
   0x5   :  { %2386 = sst [smem:[#allocation6_spill]] %s2361_s4 }
   0x6   :  { %2387 = sst [smem:[#allocation7_spill]] %s2362_s5 }
   0x7   :  { %2388 = sst [smem:[#allocation8_spill]] %s2363_s6 }
   0x8 LB: > { %s1634_s28 = sadd.s32 4294967295, %s1902_s3   ;;  %p1638_p0 = scmp.ge.s32.totalorder %s1902_s3, 1  ;;  %s1902_s3 = sphi %s2021_s3, %s33_s3  }
   0x9   : > { %p623_p1 = scmp.lt.s32.totalorder %s1902_s3, 3 }
   0xb   : > { %p624_p2 = pnand %p1638_p0, %p623_p1 }
   0xc   : > { %s2389_s4 = sld [smem:[#allocation4_spill]] (!%p624_p2)  ;;  %p691_p3 = scmp.lt.s32.totalorder (!%p624_p2), %s1634_s28, 1 }
   0xd   : > { %627 = sbr.rel (%p624_p2) target bundleno = 2070 (0x816), region = 104  ;;  %s2390_s30 = sld [smem:[#allocation2_spill]] (!%p624_p2) }
   0xe   : > { %s2391_s6 = sld [smem:[#allocation5_spill]] (!%p624_p2) }
   0xf   : > { %s2392_s2 = sld [smem:[#allocation8_spill]] (!%p624_p2) }
  0x10   : > { %s2394_s27 = sld [smem:[#allocation7_spill]] (!%p624_p2) }
  0x11   : > { %s2395_s23 = sld [smem:[#allocation3_spill]] (!%p624_p2) }
  0x12   : > { %v714_v0 = vld [vmem:[%s2389_s4 + $0x28] sm:$0xff]  ;;  %v1904_v1 = vmov 0.0   ;;  %v713_v2 = vld [vmem:[%s2389_s4 + $0x20] sm:$0xff]  ;;  %vm1905_vm0 = vmmov 0   ;;  %s2397_s28 = smov (!%p691_p3, %s1634_s28), 1  ;;  %v712_v3 = vld [vmem:[%s2389_s4 + $0x18] sm:$0xff] }
  0x13   : > { %1731 = vmatprep.subr.mxu1 %v1904_v1  ;;  %1743 = vmatprep.mubr.msk.f32.mxu1 %vm1905_vm0, %v1904_v1  ;;  %s2045_s24 = sshll.u32 %s2397_s28, 3  ;;  %v711_v4 = vld [vmem:[%s2389_s4 + $0x10] sm:$0xff]  ;;  %v710_v5 = vld [vmem:[%s2389_s4 + $0x8] sm:$0xff]  ;;  %v709_v6 = vld [vmem:[%s2389_s4] sm:$0xff]  ;;  %vm722_vm1 = vcmask 392192   ;;  %vm796_vm2 = vcmask 261120  }
  0x14   : > { %1732 = vmatpush3.msra.mxu1 %v714_v0  ;;  %1792 = vmatprep.subr.mxu0 %v1904_v1  ;;  %s694_s0 = scalar_lea.vmem %s2390_s30, %s2045_s24  ;;  %v1643_v8 = vld [vmem:[%s2391_s6] ss:$0 sm:$0xff]  ;;  %s2393_s6 = sld [smem:[#allocation6_spill]]  ;;  %v931_v31 = vld [vmem:[%s2365_s8 + $0x78] sm:$0xff]  ;;  %v930_v32 = vld [vmem:[%s2365_s8 + $0x70] sm:$0xff]  ;;  %vm1095_vm3 = vcmask 130048  }
  0x15   : > { %1733 = vmatprep.subr.mxu1 %v1904_v1  ;;  %1800 = vmatprep.mubr.msk.f32.mxu0 %vm1905_vm0, %v1904_v1  ;;  %v707_v7 = vld [vmem:[%s694_s0] sm:$0xff]  ;;  %v830_v18 = vld [vmem:[%s2392_s2 + $0x18] sm:$0xff]  ;;  %v829_v19 = vld [vmem:[%s2392_s2 + $0x10] sm:$0xff]  ;;  %s706_s0 = scalar_lea.vmem %s2379_s22, %s2045_s24 }
  0x16   : > { %1734 = vmatpush3.msra.mxu1 %v713_v2  ;;  %v828_v20 = vld [vmem:[%s2392_s2 + $0x8] sm:$0xff]  ;;  %v827_v21 = vld [vmem:[%s2392_s2] sm:$0xff]  ;;  %v927_v35 = vld [vmem:[%s2365_s8 + $0x58] sm:$0xff] }
  0x17   : > { %1735 = vmatprep.subr.mxu1 %v1904_v1  ;;  %v1646_v28 = vld [vmem:[%s2394_s27] ss:$0 sm:$0xff]  ;;  %v929_v33 = vld [vmem:[%s2365_s8 + $0x68] sm:$0xff]  ;;  %v926_v36 = vld [vmem:[%s2365_s8 + $0x50] sm:$0xff]  ;;  %s698_s1 = scalar_lea.vmem %s2395_s23, %s2045_s24 }
  0x18   : > { %1736 = vmatpush3.msra.mxu1 %v712_v3  ;;  %v928_v34 = vld [vmem:[%s2365_s8 + $0x60] sm:$0xff]  ;;  %v925_v37 = vld [vmem:[%s2365_s8 + $0x48] sm:$0xff]  ;;  %v923_v39 = vld [vmem:[%s2365_s8 + $0x38] sm:$0xff] }
  0x19   : > { %1737 = vmatprep.subr.mxu1 %v1904_v1  ;;  %v924_v38 = vld [vmem:[%s2365_s8 + $0x40] sm:$0xff]  ;;  %v922_v40 = vld [vmem:[%s2365_s8 + $0x30] sm:$0xff]  ;;  %v921_v41 = vld [vmem:[%s2365_s8 + $0x28] sm:$0xff] }
  0x1a   : > { %1738 = vmatpush3.msra.mxu1 %v711_v4  ;;  %v1645_v26 = vld [vmem:[%s2393_s6] ss:$0 sm:$0xff]  ;;  %v919_v43 = vld [vmem:[%s2365_s8 + $0x18] sm:$0xff]  ;;  %v918_v44 = vld [vmem:[%s2365_s8 + $0x10] sm:$0xff]  ;;  %s702_s6 = scalar_lea.vmem %s2378_s21, %s2045_s24 }
  0x1b   : > { %1739 = vmatprep.subr.mxu1 %v1904_v1  ;;  %v920_v42 = vld [vmem:[%s2365_s8 + $0x20] sm:$0xff]  ;;  %v917_v45 = vld [vmem:[%s2365_s8 + $0x8] sm:$0xff]  ;;  %v1014_v47 = vld [vmem:[%s2367_s10 + $0x18] sm:$0xff] }
  0x1c   : > { %1740 = vmatpush3.msra.mxu1 %v710_v5  ;;  %v916_v46 = vld [vmem:[%s2365_s8] sm:$0xff]  ;;  %v1013_v48 = vld [vmem:[%s2367_s10 + $0x10] sm:$0xff]  ;;  %1793 = vmatpush3.msra.mxu0 %v1014_v47  ;;  %v1012_v58 = vld [vmem:[%s2367_s10 + $0x8] sm:$0xff] }
  0x1d   : > { %1741 = vmatprep.subr.mxu1 %v1904_v1  ;;  %1794 = vmatprep.subr.mxu0 %v1904_v1  ;;  %v1647_v49 = vld [vmem:[%s2364_s7] ss:$0 sm:$0xff]  ;;  %v1094_v2 = vld [vmem:[%s2369_s12 + $0x8] sm:$0xff]  ;;  %v1092_v5 = vld [vmem:[%s2368_s11 + $0x18] sm:$0xff] }
  0x1e   : > { %1742 = vmatpush3.msra.mxu1 %v709_v6  ;;  %1795 = vmatpush3.msra.mxu0 %v1013_v48  ;;  %v1011_v59 = vld [vmem:[%s2367_s10] sm:$0xff]  ;;  %v1091_v6 = vld [vmem:[%s2368_s11 + $0x10] sm:$0xff]  ;;  %v1370_v47 = vld [vmem:[%s2375_s18 + $0x28] sm:$0xff] }
  0x1f   : > { %1744 = vmatmul.mubr.msk.f32.vlgmr.msra.gmra.mxu1 %vm722_vm1, %v707_v7  ;;  %1746 = vmatprep.subr.mxu1 %v1904_v1  ;;  %v1649_v61 = vld [vmem:[%s2366_s9] ss:$0 sm:$0xff]  ;;  %v1090_v7 = vld [vmem:[%s2368_s11 + $0x8] sm:$0xff] }
  0x20   : > { %1754 = vmatprep.mubr.msk.f32.mxu1 %vm1905_vm0, %v1904_v1  ;;  %1747 = vmatpush3.msra.mxu1 %v830_v18  ;;  %v1093_v3 = vld [vmem:[%s2369_s12] sm:$0xff] }
  0x21   : > { %1748 = vmatprep.subr.mxu1 %v1904_v1  ;;  %1796 = vmatprep.subr.mxu0 %v1904_v1  ;;  %v708_v4 = vld [vmem:[%s698_s1] sm:$0xff] }
  0x22   : > { %1749 = vmatpush3.msra.mxu1 %v829_v19  ;;  %1797 = vmatpush3.msra.mxu0 %v1012_v58  ;;  %v1369_v48 = vld [vmem:[%s2375_s18 + $0x20] sm:$0xff] }
  0x23   : > { %1750 = vmatprep.subr.mxu1 %v1904_v1  ;;  %1798 = vmatprep.subr.mxu0 %v1904_v1 }
  0x24   : > { %1751 = vmatpush3.msra.mxu1 %v828_v20  ;;  %1799 = vmatpush3.msra.mxu0 %v1011_v59 }
  0x25   : > { %1752 = vmatprep.subr.mxu1 %v1904_v1  ;;  %1803 = vmatprep.subr.mxu0 %v1904_v1 }
  0x26   : > { %1753 = vmatpush3.msra.mxu1 %v827_v21 }
  0x27   : > { %1757 = vmatprep.subr.mxu1 %v1904_v1 }
  0xdf   : > { %v792_v9 = vpop.f32.mrf.mxu1 }
  0xe0   : > { %v2070_v10 = vadd.f32 %v1643_v8, %v792_v9  ;;  %v1089_v8 = vld [vmem:[%s2368_s11] sm:$0xff] }
  0xe1   : > { %v1745_v11 = vpop.f32.mrf.mxu1 }
  0xe2   : > { %v797_v12 = vsel %vm796_vm2, %v2070_v10, 0.0 }
  0xe3   : > { %798 = vadd.xlane.f32.xlu0 %v797_v12 }
 0x16c   : > { %v799_v13 = vpop.xlane.xlu0 %798 }
 0x16d   : > { %v801_v14 = vmul.f32 0.03125, %v799_v13 }
 0x16f   : > { %v802_v15 = vsub.f32 %v2070_v10, %v801_v14  ;;  %v1653_v14 = vld [vmem:[%s2370_s13] ss:$0 sm:$0xff] }
 0x171   : > { %v803_v16 = vmul.f32 %v802_v15, %v802_v15 }
 0x173   : > { %v804_v17 = vsel %vm796_vm2, %v803_v16, 0.0 }
 0x174   : > { %805 = vadd.xlane.f32.xlu0 %v804_v17 }
 0x1fd   : > { %v806_v22 = vpop.xlane.xlu0 %805 }
 0x1fe   : > { %v807_v23 = vmul.f32 0.03125, %v806_v22 }
 0x200   : > { %v808_v24 = vadd.f32 1e-05, %v807_v23 }
 0x202   : > { %1888 = vrsqrt.f32 %v808_v24  ;;  %v1279_v24 = vld [vmem:[%s2373_s16 + $0x18] sm:$0xff] }
 0x20f   : > { %v1889_v25 = vpop.eup %1888 }
 0x210   : > { %v810_v27 = vmul.f32 %v1889_v25, %v802_v15  ;;  %v1278_v25 = vld [vmem:[%s2373_s16 + $0x10] sm:$0xff] }
 0x212   : > { %v818_v29 = vmul.f32 %v1645_v26, %v810_v27  ;;  %v1277_v26 = vld [vmem:[%s2373_s16 + $0x8] sm:$0xff]  ;;  %v1276_v27 = vld [vmem:[%s2373_s16] sm:$0xff] }
 0x214   : > { %v826_v30 = vadd.f32 %v1646_v28, %v818_v29 }
 0x216   : > { %1755 = vmatmul.mubr.msk.f32.vlgmr.msra.gmra.mxu1 %vm796_vm2, %v826_v30 }
 0x217   : > { %1758 = vmatpush3.msra.mxu1 %v931_v31  ;;  %1789 = vmatprep.mubr.msk.f32.mxu1 %vm1905_vm0, %v1904_v1 }
 0x218   : > { %1759 = vmatprep.subr.mxu1 %v1904_v1 }
 0x219   : > { %1760 = vmatpush3.msra.mxu1 %v930_v32  ;;  %v1654_v32 = vld [vmem:[%s2371_s14] ss:$0 sm:$0xff] }
 0x21a   : > { %1761 = vmatprep.subr.mxu1 %v1904_v1 }
 0x21b   : > { %1762 = vmatpush3.msra.mxu1 %v929_v33 }
 0x21c   : > { %1763 = vmatprep.subr.mxu1 %v1904_v1 }
 0x21d   : > { %1764 = vmatpush3.msra.mxu1 %v928_v34  ;;  %v1655_v34 = vld [vmem:[%s2372_s15] ss:$0 sm:$0xff] }
 0x21e   : > { %1765 = vmatprep.subr.mxu1 %v1904_v1 }
 0x21f   : > { %1766 = vmatpush3.msra.mxu1 %v927_v35 }
 0x220   : > { %1767 = vmatprep.subr.mxu1 %v1904_v1 }
 0x221   : > { %1768 = vmatpush3.msra.mxu1 %v926_v36 }
 0x222   : > { %1769 = vmatprep.subr.mxu1 %v1904_v1 }
 0x223   : > { %1770 = vmatpush3.msra.mxu1 %v925_v37  ;;  %v1380_v37 = vld [vmem:[%s2375_s18 + $0x78] sm:$0xff] }
 0x224   : > { %1771 = vmatprep.subr.mxu1 %v1904_v1 }
 0x225   : > { %1772 = vmatpush3.msra.mxu1 %v924_v38  ;;  %v1379_v38 = vld [vmem:[%s2375_s18 + $0x70] sm:$0xff] }
 0x226   : > { %1773 = vmatprep.subr.mxu1 %v1904_v1 }
 0x227   : > { %1774 = vmatpush3.msra.mxu1 %v923_v39  ;;  %v1378_v39 = vld [vmem:[%s2375_s18 + $0x68] sm:$0xff] }
 0x228   : > { %1775 = vmatprep.subr.mxu1 %v1904_v1 }
 0x229   : > { %1776 = vmatpush3.msra.mxu1 %v922_v40  ;;  %v1377_v40 = vld [vmem:[%s2375_s18 + $0x60] sm:$0xff] }
 0x22a   : > { %1777 = vmatprep.subr.mxu1 %v1904_v1 }
 0x22b   : > { %1778 = vmatpush3.msra.mxu1 %v921_v41  ;;  %v1376_v41 = vld [vmem:[%s2375_s18 + $0x58] sm:$0xff] }
 0x22c   : > { %1779 = vmatprep.subr.mxu1 %v1904_v1 }
 0x22d   : > { %1780 = vmatpush3.msra.mxu1 %v920_v42  ;;  %v1375_v42 = vld [vmem:[%s2375_s18 + $0x50] sm:$0xff] }
 0x22e   : > { %1781 = vmatprep.subr.mxu1 %v1904_v1 }
 0x22f   : > { %1782 = vmatpush3.msra.mxu1 %v919_v43  ;;  %v1374_v43 = vld [vmem:[%s2375_s18 + $0x48] sm:$0xff] }
 0x230   : > { %1783 = vmatprep.subr.mxu1 %v1904_v1 }
 0x231   : > { %1784 = vmatpush3.msra.mxu1 %v918_v44  ;;  %v1373_v44 = vld [vmem:[%s2375_s18 + $0x40] sm:$0xff] }
 0x232   : > { %1785 = vmatprep.subr.mxu1 %v1904_v1 }
 0x233   : > { %1786 = vmatpush3.msra.mxu1 %v917_v45  ;;  %v1372_v45 = vld [vmem:[%s2375_s18 + $0x38] sm:$0xff] }
 0x234   : > { %1787 = vmatprep.subr.mxu1 %v1904_v1 }
 0x235   : > { %1788 = vmatpush3.msra.mxu1 %v916_v46  ;;  %v1371_v46 = vld [vmem:[%s2375_s18 + $0x30] sm:$0xff] }
 0x236   : > { %1867 = vmatprep.subr.mxu1 %v1904_v1 }
 0x2d6   : > { %v907_v50 = vpop.f32.mrf.mxu1 }
 0x2d7   : > { %v908_v51 = vadd.f32 %v1647_v49, %v907_v50  ;;  %v1368_v49 = vld [vmem:[%s2375_s18 + $0x18] sm:$0xff]  ;;  %v1367_v50 = vld [vmem:[%s2375_s18 + $0x10] sm:$0xff] }
 0x2d8   : > { %v1756_v52 = vpop.f32.mrf.mxu1 }
 0x2d9   : > { %v912_v53 = vmul.f32 0.70710677, %v908_v51  ;;  %v911_v55 = vmul.f32 0.5, %v908_v51  ;;  %v1366_v51 = vld [vmem:[%s2375_s18 + $0x8] sm:$0xff]  ;;  %v1365_v52 = vld [vmem:[%s2375_s18] sm:$0xff] }
 0x2db   : > { %1890 = verf.f32 %v912_v53  ;;  %v1463_v53 = vld [vmem:[%s2377_s20 + $0x18] sm:$0xff] }
 0x2e8   : > { %v1891_v54 = vpop.eup %1890 }
 0x2e9   : > { %v914_v56 = vadd.f32 1.0, %v1891_v54  ;;  %v1656_v54 = vld [vmem:[%s2374_s17] ss:$0 sm:$0xff] }
 0x2eb   : > { %v915_v57 = vmul.f32 %v914_v56, %v911_v55 }
 0x2ed   : > { %1790 = vmatmul.mubr.f32.vlgmr.msra.gmra.mxu1 %v915_v57 }
 0x2ee   : > { %1875 = vmatprep.mubr.msk.f32.mxu1 %vm1905_vm0, %v1904_v1  ;;  %1868 = vmatpush3.msra.mxu1 %v1463_v53 }
 0x2ef   : > { %1869 = vmatprep.subr.mxu1 %v1904_v1 }
 0x3ad   : > { %v998_v60 = vpop.f32.mrf.mxu1 }
 0x3ae   : > { %v1002_v62 = vadd.f32 %v998_v60, %v2070_v10 }
 0x3af   : > { %v1791_v63 = vpop.f32.mrf.mxu1 }
 0x3b0   : > { %v1010_v0 = vadd.f32 %v1649_v61, %v1002_v62  ;;  %v1462_v63 = vld [vmem:[%s2377_s20 + $0x10] sm:$0xff] }
 0x3b1   : > { %1870 = vmatpush3.msra.mxu1 %v1462_v63 }
 0x3b2   : > { %1801 = vmatmul.mubr.msk.f32.vlgmr.msra.gmra.mxu0 %vm796_vm2, %v1010_v0  ;;  %1871 = vmatprep.subr.mxu1 %v1904_v1 }
 0x3b3   : > { %1804 = vmatpush3.msra.mxu0 %v1094_v2  ;;  %1807 = vmatprep.mubr.msk.f32.mxu0 %vm1905_vm0, %v1904_v1  ;;  %v1460_v2 = vld [vmem:[%s2377_s20] sm:$0xff] }
 0x3b4   : > { %1805 = vmatprep.subr.mxu0 %v1904_v1 }
 0x3b5   : > { %1806 = vmatpush3.msra.mxu0 %v1093_v3 }
 0x3b6   : > { %1810 = vmatprep.subr.mxu0 %v1904_v1  ;;  %1808 = vmatmul.mubr.msk.f32.vlgmr.msra.gmra.mxu0 %vm1095_vm3, %v708_v4  ;;  %v1658_v4 = vld [vmem:[%s2376_s19] ss:$0 sm:$0xff] }
 0x3b7   : > { %1811 = vmatpush3.msra.mxu0 %v1092_v5  ;;  %1818 = vmatprep.mubr.msk.f32.mxu0 %vm1905_vm0, %v1904_v1 }
 0x3b8   : > { %1812 = vmatprep.subr.mxu0 %v1904_v1 }
 0x3b9   : > { %1813 = vmatpush3.msra.mxu0 %v1091_v6 }
 0x3ba   : > { %1814 = vmatprep.subr.mxu0 %v1904_v1 }
 0x3bb   : > { %1815 = vmatpush3.msra.mxu0 %v1090_v7 }
 0x3bc   : > { %1816 = vmatprep.subr.mxu0 %v1904_v1 }
 0x3bd   : > { %1817 = vmatpush3.msra.mxu0 %v1089_v8 }
 0x3be   : > { %1819 = vmatmul.mubr.msk.f32.vlgmr.msra.gmra.mxu0 %vm796_vm2, %v1010_v0  ;;  %1821 = vmatprep.subr.mxu0 %v1904_v1  ;;  %v1461_v0 = vld [vmem:[%s2377_s20 + $0x8] sm:$0xff] }
 0x3bf   : > { %1829 = vmatprep.mubr.msk.f32.mxu0 %vm1905_vm0, %v1904_v1  ;;  %1822 = vmatpush3.msra.mxu0 %v1279_v24 }
 0x3c0   : > { %1823 = vmatprep.subr.mxu0 %v1904_v1  ;;  %1872 = vmatpush3.msra.mxu1 %v1461_v0 }
 0x3c1   : > { %1824 = vmatpush3.msra.mxu0 %v1278_v25  ;;  %1873 = vmatprep.subr.mxu1 %v1904_v1 }
 0x3c2   : > { %1825 = vmatprep.subr.mxu0 %v1904_v1  ;;  %1874 = vmatpush3.msra.mxu1 %v1460_v2 }
 0x3c3   : > { %1826 = vmatpush3.msra.mxu0 %v1277_v26 }
 0x3c4   : > { %1827 = vmatprep.subr.mxu0 %v1904_v1 }
 0x3c5   : > { %1828 = vmatpush3.msra.mxu0 %v1276_v27 }
 0x3c6   : > { %1832 = vmatprep.subr.mxu0 %v1904_v1 }
 0x472   : > { %v1084_v9 = vpop.f32.mrf.mxu0 }
 0x473   : > { %1088 = vst [vmem:[%s702_s6] sm:$0xff] %v1084_v9 }
 0x474   : > { %v1802_v10 = vpop.f32.mrf.mxu0 }
 0x476   : > { %v1165_v11 = vpop.f32.mrf.mxu0 }
 0x478   : > { %v1809_v12 = vpop.f32.mrf.mxu0 }
 0x47e   : > { %v1235_v13 = vpop.f32.mrf.mxu0 }
 0x47f   : > { %v1236_v15 = vadd.f32 %v1235_v13, %v1165_v11 }
 0x480   : > { %v1820_v16 = vpop.f32.mrf.mxu0 }
 0x481   : > { %v2233_v17 = vadd.f32 %v1653_v14, %v1236_v15 }
 0x483   : > { %v1247_v18 = vsel %vm796_vm2, %v2233_v17, 0.0 }
 0x484   : > { %1248 = vadd.xlane.f32.xlu1 %v1247_v18 }
 0x50d   : > { %v1249_v19 = vpop.xlane.xlu1 %1248 }
 0x50e   : > { %v1250_v20 = vmul.f32 0.03125, %v1249_v19 }
 0x510   : > { %v1251_v21 = vsub.f32 %v2233_v17, %v1250_v20 }
 0x512   : > { %v1252_v22 = vmul.f32 %v1251_v21, %v1251_v21 }
 0x514   : > { %v1253_v23 = vsel %vm796_vm2, %v1252_v22, 0.0 }
 0x515   : > { %1254 = vadd.xlane.f32.xlu1 %v1253_v23 }
 0x59e   : > { %v1255_v28 = vpop.xlane.xlu1 %1254 }
 0x59f   : > { %v1256_v29 = vmul.f32 0.03125, %v1255_v28 }
 0x5a1   : > { %v1257_v30 = vadd.f32 1e-05, %v1256_v29 }
 0x5a3   : > { %1892 = vrsqrt.f32 %v1257_v30 }
 0x5b0   : > { %v1893_v31 = vpop.eup %1892 }
 0x5b1   : > { %v1259_v33 = vmul.f32 %v1893_v31, %v1251_v21 }
 0x5b3   : > { %v1267_v35 = vmul.f32 %v1654_v32, %v1259_v33 }
 0x5b5   : > { %v1275_v36 = vadd.f32 %v1655_v34, %v1267_v35 }
 0x5b7   : > { %1830 = vmatmul.mubr.msk.f32.vlgmr.msra.gmra.mxu0 %vm796_vm2, %v1275_v36 }
 0x5b8   : > { %1833 = vmatpush3.msra.mxu0 %v1380_v37  ;;  %1864 = vmatprep.mubr.msk.f32.mxu0 %vm1905_vm0, %v1904_v1 }
 0x5b9   : > { %1834 = vmatprep.subr.mxu0 %v1904_v1 }
 0x5ba   : > { %1835 = vmatpush3.msra.mxu0 %v1379_v38 }
 0x5bb   : > { %1836 = vmatprep.subr.mxu0 %v1904_v1 }
 0x5bc   : > { %1837 = vmatpush3.msra.mxu0 %v1378_v39 }
 0x5bd   : > { %1838 = vmatprep.subr.mxu0 %v1904_v1 }
 0x5be   : > { %1839 = vmatpush3.msra.mxu0 %v1377_v40 }
 0x5bf   : > { %1840 = vmatprep.subr.mxu0 %v1904_v1 }
 0x5c0   : > { %1841 = vmatpush3.msra.mxu0 %v1376_v41 }
 0x5c1   : > { %1842 = vmatprep.subr.mxu0 %v1904_v1 }
 0x5c2   : > { %1843 = vmatpush3.msra.mxu0 %v1375_v42 }
 0x5c3   : > { %1844 = vmatprep.subr.mxu0 %v1904_v1 }
 0x5c4   : > { %1845 = vmatpush3.msra.mxu0 %v1374_v43 }
 0x5c5   : > { %1846 = vmatprep.subr.mxu0 %v1904_v1 }
 0x5c6   : > { %1847 = vmatpush3.msra.mxu0 %v1373_v44 }
 0x5c7   : > { %1848 = vmatprep.subr.mxu0 %v1904_v1 }
 0x5c8   : > { %1849 = vmatpush3.msra.mxu0 %v1372_v45 }
 0x5c9   : > { %1850 = vmatprep.subr.mxu0 %v1904_v1 }
 0x5ca   : > { %1851 = vmatpush3.msra.mxu0 %v1371_v46 }
 0x5cb   : > { %1852 = vmatprep.subr.mxu0 %v1904_v1 }
 0x5cc   : > { %1853 = vmatpush3.msra.mxu0 %v1370_v47 }
 0x5cd   : > { %1854 = vmatprep.subr.mxu0 %v1904_v1 }
 0x5ce   : > { %1855 = vmatpush3.msra.mxu0 %v1369_v48 }
 0x5cf   : > { %1856 = vmatprep.subr.mxu0 %v1904_v1 }
 0x5d0   : > { %1857 = vmatpush3.msra.mxu0 %v1368_v49 }
 0x5d1   : > { %1858 = vmatprep.subr.mxu0 %v1904_v1 }
 0x5d2   : > { %1859 = vmatpush3.msra.mxu0 %v1367_v50 }
 0x5d3   : > { %1860 = vmatprep.subr.mxu0 %v1904_v1 }
 0x5d4   : > { %1861 = vmatpush3.msra.mxu0 %v1366_v51 }
 0x5d5   : > { %1862 = vmatprep.subr.mxu0 %v1904_v1 }
 0x5d6   : > { %1863 = vmatpush3.msra.mxu0 %v1365_v52 }
 0x677   : > { %v1356_v55 = vpop.f32.mrf.mxu0 }
 0x678   : > { %v1357_v56 = vadd.f32 %v1656_v54, %v1356_v55 }
 0x679   : > { %v1831_v57 = vpop.f32.mrf.mxu0 }
 0x67a   : > { %v1361_v58 = vmul.f32 0.70710677, %v1357_v56  ;;  %v1360_v60 = vmul.f32 0.5, %v1357_v56 }
 0x67c   : > { %1894 = verf.f32 %v1361_v58 }
 0x689   : > { %v1895_v59 = vpop.eup %1894 }
 0x68a   : > { %v1363_v61 = vadd.f32 1.0, %v1895_v59 }
 0x68c   : > { %v1364_v62 = vmul.f32 %v1363_v61, %v1360_v60 }
 0x68e   : > { %1865 = vmatmul.mubr.f32.vlgmr.msra.gmra.mxu0 %v1364_v62 }
 0x74e   : > { %v1447_v3 = vpop.f32.mrf.mxu0 }
 0x74f   : > { %v1451_v5 = vadd.f32 %v1447_v3, %v2233_v17 }
 0x750   : > { %v1866_v6 = vpop.f32.mrf.mxu0 }
 0x751   : > { %v1459_v7 = vadd.f32 %v1658_v4, %v1451_v5 }
 0x753   : > { %1876 = vmatmul.mubr.msk.f32.vlgmr.msra.gmra.mxu1 %vm796_vm2, %v1459_v7 }
 0x813   : > { %v1533_v1 = vpop.f32.mrf.mxu1 }
 0x814   : > { %1537 = vst [vmem:[%s706_s0] sm:$0xff] %v1533_v1 }
 0x815   : > { %v1877_v8 = vpop.f32.mrf.mxu1 }
 0x816 PF: > { %s33_s3 = sadd.s32 1, %s1902_s3  }
 0x817   : > { %p30_p4 = scmp.ge.s32.totalorder %s33_s3, 4  }
 0x819   :  { %32 = sbr.rel (!%p30_p4) target bundleno = 8 (0x8), region = 149 }

</bundles_post_ra>
